<compile_context>
chip_gen: v7x
topology: tpu7x:2x2x1
jax: 0.10.0
libtpu: 0.0.40
codegen_flags: <defaults>
</compile_context>

<pallas_src>
import functools

import jax
import jax.numpy as jnp
from jax.experimental import pallas as pl
from jax.experimental.pallas import tpu as pltpu

IN_DIM = 28 * 28   # 784
H1 = 128
H2 = 64
H2_PAD = 128       # lane-dense pad of the 64-wide hidden (internal only)


def _round_up(n, m):
    return ((n + m - 1) // m) * m


def dae_kernel(x_ref, w1_ref, b1_ref, w2_ref, b2_ref,
               w3_ref, b3_ref, w4_ref, b4_ref, o_ref):
    # Whole MLP fused: 4 bf16 MXU matmuls (f32 accumulate) + VPU relu + EUP tanh.
    x = x_ref[...].astype(jnp.bfloat16)                           # in-kernel cast

    h = jnp.dot(x, w1_ref[...], preferred_element_type=jnp.float32) + b1_ref[...]
    h = jnp.maximum(h, 0.0).astype(jnp.bfloat16)                  # ReLU

    h = jnp.dot(h, w2_ref[...], preferred_element_type=jnp.float32) + b2_ref[...]
    h = jnp.maximum(h, 0.0).astype(jnp.bfloat16)                  # ReLU

    h = jnp.dot(h, w3_ref[...], preferred_element_type=jnp.float32) + b3_ref[...]
    h = jnp.maximum(h, 0.0).astype(jnp.bfloat16)                  # ReLU

    h = jnp.dot(h, w4_ref[...], preferred_element_type=jnp.float32) + b4_ref[...]
    o_ref[...] = jnp.tanh(h)                                      # Tanh, f32 out


def pad_params(params):
    """Cast weights to bf16 and zero-pad only the internal 64-wide hidden dim.

    Zero padding is exact: padded b2/W2 columns make the padded h2 lanes
    relu(0)=0, which then hit zero W3 rows. W4/b4 are NOT padded -- the kernel
    writes exactly 784 output columns."""
    w1, b1, w2, b2, w3, b3, w4, b4 = params

    def pad2(a, shape):
        out = jnp.zeros(shape, a.dtype)
        return out.at[:a.shape[0], :a.shape[1]].set(a)

    return (
        w1.astype(jnp.bfloat16),                         # (784, 128)
        b1.astype(jnp.float32),                          # (1, 128)
        pad2(w2, (H1, H2_PAD)).astype(jnp.bfloat16),     # (128, 128)
        pad2(b2, (1, H2_PAD)).astype(jnp.float32),       # (1, 128)
        pad2(w3, (H2_PAD, H1)).astype(jnp.bfloat16),     # (128, 128)
        b3.astype(jnp.float32),                          # (1, 128)
        w4.astype(jnp.bfloat16),                         # (128, 784)
        b4.astype(jnp.float32),                          # (1, 784)
    )


@functools.partial(jax.jit, static_argnames=("block_b",))
def denoising_autoencoder(x, padded_params, block_b=512):
    """x: (B, 784) f32 -> (B, 784) f32, identical to the PyTorch forward."""
    B, D = x.shape
    assert D == IN_DIM

    # Batch tile: multiple of 16 (bf16 sublane packing), capped at block_b, and
    # small enough that the grid has >= 2 steps when B permits so both v7x
    # TensorCores are fed. For large B this is simply block_b.
    half = -(-B // 2)                       # cdiv(B, 2)
    bb = min(block_b, _round_up(half, 16))
    grid = -(-B // bb)                      # cdiv(B, bb); partial last tile OK

    w1, b1, w2, b2, w3, b3, w4, b4 = padded_params

    # Weights/biases (< 0.5 MiB total) are grid-invariant: constant (0, 0)
    # index_map keeps them resident in VMEM across grid steps (no re-DMA).
    full = lambda a: pl.BlockSpec(a.shape, lambda i: (0, 0))

    out = pl.pallas_call(
        dae_kernel,
        out_shape=jax.ShapeDtypeStruct((B, IN_DIM), jnp.float32),
        grid=(grid,),
        in_specs=[
            pl.BlockSpec((bb, IN_DIM), lambda i: (i, 0)),   # x tile, f32, 784-wide
            full(w1), full(b1),
            full(w2), full(b2),
            full(w3), full(b3),
            full(w4), full(b4),
        ],
        out_specs=pl.BlockSpec((bb, IN_DIM), lambda i: (i, 0)),
        compiler_params=pltpu.CompilerParams(
            dimension_semantics=("parallel",),
            vmem_limit_bytes=24 * 1024 * 1024),
    )(x, w1, b1, w2, b2, w3, b3, w4, b4)

    return out


def init_params(key):
    """Deterministic init mimicking nn.Linear default (uniform +-1/sqrt(fan_in)).

    Weights are stored as (in_features, out_features); biases as (1, out)."""
    dims = [(IN_DIM, H1), (H1, H2), (H2, H1), (H1, IN_DIM)]
    params = []
    for (fan_in, fan_out) in dims:
        key, kw, kb = jax.random.split(key, 3)
        bound = 1.0 / (fan_in ** 0.5)
        w = jax.random.uniform(kw, (fan_in, fan_out), jnp.float32, -bound, bound)
        b = jax.random.uniform(kb, (1, fan_out), jnp.float32, -bound, bound)
        params += [w, b]
    return tuple(params)


def reference_forward(x, params):
    w1, b1, w2, b2, w3, b3, w4, b4 = params
    h = jax.nn.relu(x @ w1 + b1)
    h = jax.nn.relu(h @ w2 + b2)
    h = jax.nn.relu(h @ w3 + b3)
    return jnp.tanh(h @ w4 + b4)


if __name__ == "__main__":
    key = jax.random.PRNGKey(0)
    key, kx = jax.random.split(key)

    B = 37  # small batch, deliberately not a multiple of the tile -> partial tile
    x = jax.random.normal(kx, (B, IN_DIM), jnp.float32)

    params = init_params(key)          # f32, PyTorch-equivalent shapes
    padded = pad_params(params)        # bf16 weights, internal-hidden pad only

    y = denoising_autoencoder(x, padded)
    y = jax.block_until_ready(y)

    y_ref = reference_forward(x, params)   # pure f32 reference
    assert y.shape == (B, IN_DIM)
    # bf16 matmul inputs (f32 accumulation) -> looser tolerance than pure f32.
    assert float(jnp.max(jnp.abs(y - y_ref))) < 5e-2

    print("KERNEL_OK")
</pallas_src>

<mosaic_0001>
module attributes {stable_mosaic.version = 11 : i64} {
  func.func @dae_kernel(%arg0: i32, %arg1: memref<32x784xf32, #tpu.memory_space<vmem>>, %arg2: memref<784x128xbf16, #tpu.memory_space<vmem>>, %arg3: memref<1x128xf32, #tpu.memory_space<vmem>>, %arg4: memref<128x128xbf16, #tpu.memory_space<vmem>>, %arg5: memref<1x128xf32, #tpu.memory_space<vmem>>, %arg6: memref<128x128xbf16, #tpu.memory_space<vmem>>, %arg7: memref<1x128xf32, #tpu.memory_space<vmem>>, %arg8: memref<128x784xbf16, #tpu.memory_space<vmem>>, %arg9: memref<1x784xf32, #tpu.memory_space<vmem>>, %arg10: memref<32x784xf32, #tpu.memory_space<vmem>>) attributes {dimension_semantics = [#tpu.dimension_semantics<parallel>], iteration_bounds = array<i64: 2>, scalar_prefetch = 0 : i64, scratch_operands = 0 : i64, tpu.core_type = #tpu.core_type<tc>, window_params = [{transform_indices = @transform_0, window_bounds = array<i64: 32, 784>}, {pipeline_mode = #tpu.pipeline_mode<synchronous>, transform_indices = @transform_1, window_bounds = array<i64: 784, 128>}, {pipeline_mode = #tpu.pipeline_mode<synchronous>, transform_indices = @transform_2, window_bounds = array<i64: 1, 128>}, {pipeline_mode = #tpu.pipeline_mode<synchronous>, transform_indices = @transform_3, window_bounds = array<i64: 128, 128>}, {pipeline_mode = #tpu.pipeline_mode<synchronous>, transform_indices = @transform_4, window_bounds = array<i64: 1, 128>}, {pipeline_mode = #tpu.pipeline_mode<synchronous>, transform_indices = @transform_5, window_bounds = array<i64: 128, 128>}, {pipeline_mode = #tpu.pipeline_mode<synchronous>, transform_indices = @transform_6, window_bounds = array<i64: 1, 128>}, {pipeline_mode = #tpu.pipeline_mode<synchronous>, transform_indices = @transform_7, window_bounds = array<i64: 128, 784>}, {pipeline_mode = #tpu.pipeline_mode<synchronous>, transform_indices = @transform_8, window_bounds = array<i64: 1, 784>}, {transform_indices = @transform_9, window_bounds = array<i64: 32, 784>}]} {
    %c0 = arith.constant 0 : index
    %c0_0 = arith.constant 0 : index
    %0 = vector.load %arg1[%c0, %c0_0] : memref<32x784xf32, #tpu.memory_space<vmem>>, vector<32x784xf32>
    %1 = arith.truncf %0 : vector<32x784xf32> to vector<32x784xbf16>
    %c0_1 = arith.constant 0 : index
    %c0_2 = arith.constant 0 : index
    %2 = vector.load %arg2[%c0_1, %c0_2] : memref<784x128xbf16, #tpu.memory_space<vmem>>, vector<784x128xbf16>
    %cst = arith.constant dense<0.000000e+00> : vector<32x128xf32>
    %3 = tpu.matmul %1, %2, %cst {dimension_numbers = #tpu.dot_dimension_numbers<[1], [0], [0], [1], [0, 0, 1, 1], [], []>} : vector<32x784xbf16>, vector<784x128xbf16>, vector<32x128xf32> -> vector<32x128xf32>
    %c0_3 = arith.constant 0 : index
    %c0_4 = arith.constant 0 : index
    %4 = vector.load %arg3[%c0_3, %c0_4] : memref<1x128xf32, #tpu.memory_space<vmem>>, vector<1x128xf32>
    %5 = vector.broadcast %4 : vector<1x128xf32> to vector<32x128xf32>
    %6 = arith.addf %3, %5 : vector<32x128xf32>
    %cst_5 = arith.constant 0.000000e+00 : f32
    %7 = vector.broadcast %cst_5 : f32 to vector<32x128xf32>
    %8 = arith.maximumf %6, %7 : vector<32x128xf32>
    %9 = arith.truncf %8 : vector<32x128xf32> to vector<32x128xbf16>
    %c0_6 = arith.constant 0 : index
    %c0_7 = arith.constant 0 : index
    %10 = vector.load %arg4[%c0_6, %c0_7] : memref<128x128xbf16, #tpu.memory_space<vmem>>, vector<128x128xbf16>
    %cst_8 = arith.constant dense<0.000000e+00> : vector<32x128xf32>
    %11 = tpu.matmul %9, %10, %cst_8 {dimension_numbers = #tpu.dot_dimension_numbers<[1], [0], [0], [1], [0, 0, 1, 1], [], []>} : vector<32x128xbf16>, vector<128x128xbf16>, vector<32x128xf32> -> vector<32x128xf32>
    %c0_9 = arith.constant 0 : index
    %c0_10 = arith.constant 0 : index
    %12 = vector.load %arg5[%c0_9, %c0_10] : memref<1x128xf32, #tpu.memory_space<vmem>>, vector<1x128xf32>
    %13 = vector.broadcast %12 : vector<1x128xf32> to vector<32x128xf32>
    %14 = arith.addf %11, %13 : vector<32x128xf32>
    %cst_11 = arith.constant 0.000000e+00 : f32
    %15 = vector.broadcast %cst_11 : f32 to vector<32x128xf32>
    %16 = arith.maximumf %14, %15 : vector<32x128xf32>
    %17 = arith.truncf %16 : vector<32x128xf32> to vector<32x128xbf16>
    %c0_12 = arith.constant 0 : index
    %c0_13 = arith.constant 0 : index
    %18 = vector.load %arg6[%c0_12, %c0_13] : memref<128x128xbf16, #tpu.memory_space<vmem>>, vector<128x128xbf16>
    %cst_14 = arith.constant dense<0.000000e+00> : vector<32x128xf32>
    %19 = tpu.matmul %17, %18, %cst_14 {dimension_numbers = #tpu.dot_dimension_numbers<[1], [0], [0], [1], [0, 0, 1, 1], [], []>} : vector<32x128xbf16>, vector<128x128xbf16>, vector<32x128xf32> -> vector<32x128xf32>
    %c0_15 = arith.constant 0 : index
    %c0_16 = arith.constant 0 : index
    %20 = vector.load %arg7[%c0_15, %c0_16] : memref<1x128xf32, #tpu.memory_space<vmem>>, vector<1x128xf32>
    %21 = vector.broadcast %20 : vector<1x128xf32> to vector<32x128xf32>
    %22 = arith.addf %19, %21 : vector<32x128xf32>
    %cst_17 = arith.constant 0.000000e+00 : f32
    %23 = vector.broadcast %cst_17 : f32 to vector<32x128xf32>
    %24 = arith.maximumf %22, %23 : vector<32x128xf32>
    %25 = arith.truncf %24 : vector<32x128xf32> to vector<32x128xbf16>
    %c0_18 = arith.constant 0 : index
    %c0_19 = arith.constant 0 : index
    %26 = vector.load %arg8[%c0_18, %c0_19] : memref<128x784xbf16, #tpu.memory_space<vmem>>, vector<128x784xbf16>
    %cst_20 = arith.constant dense<0.000000e+00> : vector<32x784xf32>
    %27 = tpu.matmul %25, %26, %cst_20 {dimension_numbers = #tpu.dot_dimension_numbers<[1], [0], [0], [1], [0, 0, 1, 1], [], []>} : vector<32x128xbf16>, vector<128x784xbf16>, vector<32x784xf32> -> vector<32x784xf32>
    %c0_21 = arith.constant 0 : index
    %c0_22 = arith.constant 0 : index
    %28 = vector.load %arg9[%c0_21, %c0_22] : memref<1x784xf32, #tpu.memory_space<vmem>>, vector<1x784xf32>
    %29 = vector.broadcast %28 : vector<1x784xf32> to vector<32x784xf32>
    %30 = arith.addf %27, %29 : vector<32x784xf32>
    %31 = math.tanh %30 : vector<32x784xf32>
    %c0_23 = arith.constant 0 : index
    %c0_24 = arith.constant 0 : index
    %32 = vector.load %arg10[%c0_23, %c0_24] : memref<32x784xf32, #tpu.memory_space<vmem>>, vector<32x784xf32>
    tpu.vector_store %arg10[%c0_23, %c0_24], %31 {strides = array<i32>} : memref<32x784xf32, #tpu.memory_space<vmem>>, vector<32x784xf32>,
    return
  }
  func.func @transform_0(%arg0: i32) -> (i32, i32) {
    %c0_i32 = arith.constant 0 : i32
    %c0_i32_0 = arith.constant 0 : i32
    return %arg0, %c0_i32 : i32, i32
  }
  func.func @transform_1(%arg0: i32) -> (i32, i32) {
    %c0_i32 = arith.constant 0 : i32
    %c0_i32_0 = arith.constant 0 : i32
    %c0_i32_1 = arith.constant 0 : i32
    return %c0_i32, %c0_i32_0 : i32, i32
  }
  func.func @transform_2(%arg0: i32) -> (i32, i32) {
    %c0_i32 = arith.constant 0 : i32
    %c0_i32_0 = arith.constant 0 : i32
    %c0_i32_1 = arith.constant 0 : i32
    return %c0_i32, %c0_i32_0 : i32, i32
  }
  func.func @transform_3(%arg0: i32) -> (i32, i32) {
    %c0_i32 = arith.constant 0 : i32
    %c0_i32_0 = arith.constant 0 : i32
    %c0_i32_1 = arith.constant 0 : i32
    return %c0_i32, %c0_i32_0 : i32, i32
  }
  func.func @transform_4(%arg0: i32) -> (i32, i32) {
    %c0_i32 = arith.constant 0 : i32
    %c0_i32_0 = arith.constant 0 : i32
    %c0_i32_1 = arith.constant 0 : i32
    return %c0_i32, %c0_i32_0 : i32, i32
  }
  func.func @transform_5(%arg0: i32) -> (i32, i32) {
    %c0_i32 = arith.constant 0 : i32
    %c0_i32_0 = arith.constant 0 : i32
    %c0_i32_1 = arith.constant 0 : i32
    return %c0_i32, %c0_i32_0 : i32, i32
  }
  func.func @transform_6(%arg0: i32) -> (i32, i32) {
    %c0_i32 = arith.constant 0 : i32
    %c0_i32_0 = arith.constant 0 : i32
    %c0_i32_1 = arith.constant 0 : i32
    return %c0_i32, %c0_i32_0 : i32, i32
  }
  func.func @transform_7(%arg0: i32) -> (i32, i32) {
    %c0_i32 = arith.constant 0 : i32
    %c0_i32_0 = arith.constant 0 : i32
    %c0_i32_1 = arith.constant 0 : i32
    return %c0_i32, %c0_i32_0 : i32, i32
  }
  func.func @transform_8(%arg0: i32) -> (i32, i32) {
    %c0_i32 = arith.constant 0 : i32
    %c0_i32_0 = arith.constant 0 : i32
    %c0_i32_1 = arith.constant 0 : i32
    return %c0_i32, %c0_i32_0 : i32, i32
  }
  func.func @transform_9(%arg0: i32) -> (i32, i32) {
    %c0_i32 = arith.constant 0 : i32
    %c0_i32_0 = arith.constant 0 : i32
    return %arg0, %c0_i32 : i32, i32
  }
}

</mosaic_0001>

<bundles_post_ra>
// kernel: denoising_autoencoder.1
= control target key start
LH: loop header
LB: loop body
LE: loop exit
PB: predicated region body
PF: predicated region fallthrough
CT: control target
= control target key end

     0   :  { %14 = vsyncpa [#allocation3], 0  ;;  %s3287_s0 = inlined_call_operand.vmem [shape: f32[37,784], index: 0, kind: input, shape index: {}]   ;;  %s3288_s1 = inlined_call_operand.vmem [shape: bf16[784,128], index: 1, kind: input, shape index: {}]   ;;  %s3289_s2 = inlined_call_operand.vmem [shape: f32[1,128], index: 2, kind: input, shape index: {}]   ;;  %s3290_s3 = inlined_call_operand.vmem [shape: bf16[128,128], index: 3, kind: input, shape index: {}]   ;;  %s3291_s4 = inlined_call_operand.vmem [shape: f32[1,128], index: 4, kind: input, shape index: {}]   ;;  %s3292_s5 = inlined_call_operand.vmem [shape: bf16[128,128], index: 5, kind: input, shape index: {}]   ;;  %s3293_s6 = inlined_call_operand.vmem [shape: f32[1,128], index: 6, kind: input, shape index: {}]   ;;  %s3294_s7 = inlined_call_operand.vmem [shape: bf16[128,784], index: 7, kind: input, shape index: {}]   ;;  %s3295_s8 = inlined_call_operand.vmem [shape: f32[1,784], index: 8, kind: input, shape index: {}]   ;;  %s3296_s9 = inlined_call_operand.hbm [shape: f32[37,784], index: 9, kind: output, shape index: {}]  }
   0x1   :  { %16 = vsyncpa [#allocation3 + $0x1], 0  ;;  %s2694_s30 = smov 0   ;;  %s2696_s10 = smov 0  }
   0x2   :  { %s2698_s11 = smov 0   ;;  %s2700_s12 = smov 0  }
   0x3 LB: > { %s2715_s13 = sadd.s32 4294967295, %s2638_s12   ;;  %s2007_s14 = sadd.s32 4294967294, %s2638_s12   ;;  %s2638_s12 = sphi %s2700_s12, %s3302_s12   ;;  %s2634_s11 = sphi %s2698_s11, %s3301_s11   ;;  %s2630_s10 = sphi %s2696_s10, %s3300_s10   ;;  %s2626_s30 = sphi %s2694_s30, %s3299_s30  }
   0x4   : > { %s2719_s15 = sadd.s32 1, %s2638_s12   ;;  %s223_s16 = sadd.s32 1, %s2634_s11 }
   0x5   : > { %s220_s17 = ssub.s32 %s2638_s12, %s2719_s15  ;;  %p233_p0 = scmp.ne.s32.totalorder %s2634_s11, %s2630_s10 }
   0x6   : > { %p221_p1 = scmp.eq.s32.totalorder %s220_s17, 0  ;;  %p234_p2 = scmp.eq.s32.totalorder %s2715_s13, 1 }
   0x7   : > { %p239_p3 = scmp.ne.s32.totalorder %s2630_s10, %s2626_s30  ;;  %p240_p4 = scmp.eq.s32.totalorder %s2007_s14, 1 }
   0x8   : > { %s2730_s18 = scalar_select %p221_p1, %s2634_s11, %s223_s16  }
   0x9   : > { %p2732_p5 = por %p234_p2, %p233_p0  ;;  %p2736_p6 = por %p240_p4, %p239_p3 }
   0xa   : > { %p2010_p7 = scmp.ge.s32.totalorder %s2638_s12, 1  ;;  %p302_p8 = scmp.lt.s32.totalorder %s2638_s12, 3 }
   0xc   : > { %p303_p9 = pnand %p2010_p7, %p302_p8 }
   0xd   : > { %v2375_v0 = vld [vmem:[%s3288_s1 + $0x40] sm:$0xff] (!%p303_p9)   ;;  %v2379_v4 = vld [vmem:[%s3288_s1 + $0x48] sm:$0xff] (!%p303_p9)   ;;  %v2383_v8 = vld [vmem:[%s3288_s1 + $0x50] sm:$0xff] (!%p303_p9)   ;;  %s2785_s25 = sshll.u32 (!%p303_p9), %s2715_s13, 2  ;;  %vm809_vm0 = vcmask (!%p303_p9), 130048   ;;  %s341_s23 = sand.u32 (!%p303_p9), 1, %s2630_s10  }
   0xe   : > { %306 = sbr.rel (%p303_p9) target bundleno = 1052 (0x41c), region = 56  ;;  %v2376_v1 = vld [vmem:[%s3288_s1] sm:$0xff] (!%p303_p9)   ;;  %2148 = vmatprep.subr.bf16.mxu0 (!%p303_p9), %v2375_v0  ;;  %v2380_v5 = vld [vmem:[%s3288_s1 + $0x8] sm:$0xff] (!%p303_p9)   ;;  %v2384_v9 = vld [vmem:[%s3288_s1 + $0x10] sm:$0xff] (!%p303_p9)   ;;  %p350_p10 = scmp.lt.s32.totalorder (!%p303_p9), %s2785_s25, 4 }
   0xf   : > { %v2377_v2 = vld [vmem:[%s3288_s1 + $0xc0] sm:$0xff] (!%p303_p9)   ;;  %2149 = vmatpush3.bf16.msra.mxu0 (!%p303_p9), %v2376_v1  ;;  %v2381_v6 = vld [vmem:[%s3288_s1 + $0xc8] sm:$0xff] (!%p303_p9)   ;;  %v2385_v10 = vld [vmem:[%s3288_s1 + $0xd0] sm:$0xff] (!%p303_p9)   ;;  %s2331_s26 = smul.u32 (!%p303_p9), 224, %s341_s23  ;;  %s3226_s16 = scalar_lea.sflag (!%p303_p9), [#allocation3], %s341_s23 }
  0x10   : > { %v2378_v3 = vld [vmem:[%s3288_s1 + $0x80] sm:$0xff] (!%p303_p9)   ;;  %2176 = vmatprep.subr.bf16.mxu1 (!%p303_p9), %v2377_v2  ;;  %2150 = vmatprep.subr.bf16.mxu0 (!%p303_p9), %v2379_v4  ;;  %v2382_v7 = vld [vmem:[%s3288_s1 + $0x88] sm:$0xff] (!%p303_p9)   ;;  %v2386_v11 = vld [vmem:[%s3288_s1 + $0x90] sm:$0xff] (!%p303_p9)  }
  0x11   : > { %2177 = vmatpush3.bf16.msra.mxu1 (!%p303_p9), %v2378_v3  ;;  %v2387_v12 = vld [vmem:[%s3288_s1 + $0x58] sm:$0xff] (!%p303_p9)   ;;  %v2391_v16 = vld [vmem:[%s3288_s1 + $0x60] sm:$0xff] (!%p303_p9)   ;;  %v2395_v20 = vld [vmem:[%s3288_s1 + $0x68] sm:$0xff] (!%p303_p9)   ;;  %s3184_s14 = scalar_lea.vmem (!%p303_p9), [#allocation2], %s2331_s26 }
  0x12   : > { %2178 = vmatprep.subr.bf16.mxu1 (!%p303_p9), %v2381_v6  ;;  %v2388_v13 = vld [vmem:[%s3288_s1 + $0x18] sm:$0xff] (!%p303_p9)   ;;  %v2392_v17 = vld [vmem:[%s3288_s1 + $0x20] sm:$0xff] (!%p303_p9)   ;;  %v2396_v21 = vld [vmem:[%s3288_s1 + $0x28] sm:$0xff] (!%p303_p9)  }
  0x13   : > { %2151 = vmatpush3.bf16.msra.mxu0 (!%p303_p9), %v2380_v5  ;;  %v2389_v14 = vld [vmem:[%s3288_s1 + $0xd8] sm:$0xff] (!%p303_p9)   ;;  %v2393_v18 = vld [vmem:[%s3288_s1 + $0xe0] sm:$0xff] (!%p303_p9)   ;;  %v2397_v22 = vld [vmem:[%s3288_s1 + $0xe8] sm:$0xff] (!%p303_p9)  }
  0x14   : > { %2152 = vmatprep.subr.bf16.mxu0 (!%p303_p9), %v2383_v8  ;;  %v2390_v15 = vld [vmem:[%s3288_s1 + $0x98] sm:$0xff] (!%p303_p9)   ;;  %v2394_v19 = vld [vmem:[%s3288_s1 + $0xa0] sm:$0xff] (!%p303_p9)   ;;  %v2398_v23 = vld [vmem:[%s3288_s1 + $0xa8] sm:$0xff] (!%p303_p9)  }
  0x15   : > { %2179 = vmatpush3.bf16.msra.mxu1 %v2382_v7  ;;  %s351_s29 = scalar_select %p350_p10, %s2785_s25, 4  ;;  %v2399_v24 = vld [vmem:[%s3288_s1 + $0x70] sm:$0xff]   ;;  %v2403_v28 = vld [vmem:[%s3288_s1 + $0x78] sm:$0xff]   ;;  %v2407_v38 = vld [vmem:[%s3288_s1 + $0x140] sm:$0xff]  }
  0x16   : > { %2180 = vmatprep.subr.bf16.mxu1 %v2385_v10  ;;  %v2400_v25 = vld [vmem:[%s3288_s1 + $0x30] sm:$0xff]   ;;  %v2404_v29 = vld [vmem:[%s3288_s1 + $0x38] sm:$0xff]   ;;  %v2408_v42 = vld [vmem:[%s3288_s1 + $0x100] sm:$0xff]   ;;  %s1932_s17 = ssub.s32 (%p2732_p5), 5, %s2785_s25 }
  0x17   : > { %2153 = vmatpush3.bf16.msra.mxu0 %v2384_v9  ;;  %s2332_s27 = smul.u32 56, %s351_s29  ;;  %v2401_v26 = vld [vmem:[%s3288_s1 + $0xf0] sm:$0xff]   ;;  %v2405_v30 = vld [vmem:[%s3288_s1 + $0xf8] sm:$0xff]   ;;  %v2409_v46 = vld [vmem:[%s3288_s1 + $0x148] sm:$0xff]   ;;  %p1933_p11 = scmp.lt.s32.totalorder (%p2732_p5), %s1932_s17, 4 }
  0x18   : > { %2154 = vmatprep.subr.bf16.mxu0 %v2387_v12  ;;  %v2402_v27 = vld [vmem:[%s3288_s1 + $0xb0] sm:$0xff]   ;;  %v2406_v34 = vld [vmem:[%s3288_s1 + $0xb8] sm:$0xff]   ;;  %v2410_v47 = vld [vmem:[%s3288_s1 + $0x108] sm:$0xff]  }
  0x19   : > { %2181 = vmatpush3.bf16.msra.mxu1 %v2386_v11  ;;  %s2837_s28 = scalar_lea.vmem %s3287_s0, %s2332_s27  ;;  %v2411_v48 = vld [vmem:[%s3288_s1 + $0x150] sm:$0xff]   ;;  %v2413_v50 = vld [vmem:[%s3288_s1 + $0x158] sm:$0xff]   ;;  %v2415_v54 = vld [vmem:[%s3288_s1 + $0x160] sm:$0xff]  }
  0x1a   : > { %2182 = vmatprep.subr.bf16.mxu1 %v2389_v14  ;;  %v369_v31 = vld [vmem:[%s2837_s28 + $0x8] sm:$0xff]  ;;  %v376_v32 = vld [vmem:[%s2837_s28 + $0x40] sm:$0xff]  ;;  %v375_v36 = vld [vmem:[%s2837_s28 + $0x38] sm:$0xff] }
  0x1b   : > { %2155 = vmatpush3.bf16.msra.mxu0 %v2388_v13  ;;  %v397_v33 = vpack.c.bf16 %v376_v32, %v369_v31  ;;  %v368_v35 = vld [vmem:[%s2837_s28] sm:$0xff]  ;;  %v371_v39 = vld [vmem:[%s2837_s28 + $0x18] sm:$0xff]  ;;  %v378_v40 = vld [vmem:[%s2837_s28 + $0x50] sm:$0xff] }
  0x1c   : > { %2156 = vmatprep.subr.bf16.mxu0 %v2391_v16  ;;  %v396_v37 = vpack.c.bf16 %v375_v36, %v368_v35  ;;  %v399_v41 = vpack.c.bf16 %v378_v40, %v371_v39  ;;  %v370_v43 = vld [vmem:[%s2837_s28 + $0x10] sm:$0xff]  ;;  %v377_v44 = vld [vmem:[%s2837_s28 + $0x48] sm:$0xff]  ;;  %v2414_v51 = vld [vmem:[%s3288_s1 + $0x118] sm:$0xff]  }
  0x1d   : > { %2183 = vmatpush3.bf16.msra.mxu1 %v2390_v15  ;;  %848 = vmatprep.mubr.bf16.mxu0 %v397_v33  ;;  %v398_v45 = vpack.c.bf16 %v377_v44, %v370_v43  ;;  %v2412_v49 = vld [vmem:[%s3288_s1 + $0x110] sm:$0xff]   ;;  %v383_v52 = vld [vmem:[%s2837_s28 + $0x78] sm:$0xff]  ;;  %v389_v57 = vld [vmem:[%s2837_s28 + $0xa8] sm:$0xff] }
  0x1e   : > { %2184 = vmatprep.subr.bf16.mxu1 %v2393_v18  ;;  %897 = vmatprep.mubr.bf16.mxu1 %v399_v41  ;;  %v390_v53 = vld [vmem:[%s2837_s28 + $0xb0] sm:$0xff]  ;;  %v2416_v58 = vld [vmem:[%s3288_s1 + $0x120] sm:$0xff]   ;;  %v385_v60 = vld [vmem:[%s2837_s28 + $0x88] sm:$0xff] }
  0x1f   : > { %2157 = vmatpush3.bf16.msra.mxu0 %v2392_v17  ;;  %v404_v55 = vpack.c.bf16 %v390_v53, %v383_v52  ;;  %v382_v56 = vld [vmem:[%s2837_s28 + $0x70] sm:$0xff]  ;;  %v392_v61 = vld [vmem:[%s2837_s28 + $0xc0] sm:$0xff]  ;;  %v391_v0 = vld [vmem:[%s2837_s28 + $0xb8] sm:$0xff] }
  0x20   : > { %2158 = vmatprep.subr.bf16.mxu0 %v2395_v20  ;;  %v403_v59 = vpack.c.bf16 %v389_v57, %v382_v56  ;;  %v384_v62 = vld [vmem:[%s2837_s28 + $0x80] sm:$0xff]  ;;  %v406_v63 = vpack.c.bf16 %v392_v61, %v385_v60  ;;  %v2417_v1 = vld [vmem:[%s3288_s1 + $0x168] sm:$0xff]   ;;  %v2419_v5 = vld [vmem:[%s3288_s1 + $0x170] sm:$0xff]  }
  0x21   : > { %2185 = vmatpush3.bf16.msra.mxu1 %v2394_v19  ;;  %v405_v2 = vpack.c.bf16 %v391_v0, %v384_v62  ;;  %v2421_v3 = vld [vmem:[%s3288_s1 + $0x180] sm:$0xff]   ;;  %v2418_v4 = vld [vmem:[%s3288_s1 + $0x128] sm:$0xff]   ;;  %v374_v9 = vld [vmem:[%s2837_s28 + $0x30] sm:$0xff] }
  0x22   : > { %2186 = vmatprep.subr.bf16.mxu1 %v2397_v22  ;;  %v373_v6 = vld [vmem:[%s2837_s28 + $0x28] sm:$0xff]  ;;  %v380_v7 = vld [vmem:[%s2837_s28 + $0x60] sm:$0xff]  ;;  %v395_v12 = vld [vmem:[%s2837_s28 + $0xd8] sm:$0xff] }
  0x23   : > { %2159 = vmatpush3.bf16.msra.mxu0 %v2396_v21  ;;  %v401_v8 = vpack.c.bf16 %v380_v7, %v373_v6  ;;  %v381_v10 = vld [vmem:[%s2837_s28 + $0x68] sm:$0xff]  ;;  %v388_v11 = vld [vmem:[%s2837_s28 + $0xa0] sm:$0xff]  ;;  %v2420_v13 = vld [vmem:[%s3288_s1 + $0x130] sm:$0xff]  }
  0x24   : > { %2160 = vmatprep.subr.bf16.mxu0 %v2399_v24  ;;  %v402_v14 = vpack.c.bf16 %v381_v10, %v374_v9  ;;  %v409_v15 = vpack.c.bf16 %v395_v12, %v388_v11  ;;  %v2422_v16 = vld [vmem:[%s3288_s1 + $0x178] sm:$0xff]   ;;  %v372_v18 = vld [vmem:[%s2837_s28 + $0x20] sm:$0xff]  ;;  %v394_v21 = vld [vmem:[%s2837_s28 + $0xd0] sm:$0xff] }
  0x25   : > { %2187 = vmatpush3.bf16.msra.mxu1 %v2398_v23  ;;  %v2423_v17 = vld [vmem:[%s3288_s1 + $0x138] sm:$0xff]   ;;  %v386_v24 = vld [vmem:[%s2837_s28 + $0x90] sm:$0xff]  ;;  %v2428_v31 = vld [vmem:[%s3290_s3 + $0x20] sm:$0xff]  }
  0x26   : > { %2188 = vmatprep.subr.bf16.mxu1 %v2401_v26  ;;  %v379_v19 = vld [vmem:[%s2837_s28 + $0x58] sm:$0xff]  ;;  %v2429_v32 = vld [vmem:[%s3290_s3 + $0x28] sm:$0xff]   ;;  %v2430_v33 = vld [vmem:[%s3290_s3 + $0x30] sm:$0xff]  }
  0x27   : > { %2161 = vmatpush3.bf16.msra.mxu0 %v2400_v25  ;;  %v387_v20 = vld [vmem:[%s2837_s28 + $0x98] sm:$0xff]  ;;  %v400_v22 = vpack.c.bf16 %v379_v19, %v372_v18  ;;  %v393_v25 = vld [vmem:[%s2837_s28 + $0xc8] sm:$0xff]  ;;  %v2432_v35 = vld [vmem:[%s3292_s5] sm:$0xff]  }
  0x28   : > { %2162 = vmatprep.subr.bf16.mxu0 %v2403_v28  ;;  %v408_v23 = vpack.c.bf16 %v394_v21, %v387_v20  ;;  %v407_v26 = vpack.c.bf16 %v393_v25, %v386_v24  ;;  %v2425_v28 = vld [vmem:[%s3290_s3 + $0x8] sm:$0xff]   ;;  %v2436_v39 = vld [vmem:[%s3292_s5 + $0x20] sm:$0xff]  }
  0x29   : > { %2189 = vmatpush3.bf16.msra.mxu1 %v2402_v27  ;;  %v2424_v27 = vld [vmem:[%s3290_s3] sm:$0xff]   ;;  %v2433_v36 = vld [vmem:[%s3292_s5 + $0x8] sm:$0xff]  }
  0x2a   : > { %2190 = vmatprep.subr.bf16.mxu1 %v2405_v30  ;;  %v2427_v30 = vld [vmem:[%s3290_s3 + $0x18] sm:$0xff]   ;;  %v2437_v40 = vld [vmem:[%s3292_s5 + $0x28] sm:$0xff]  }
  0x2b   : > { %2163 = vmatpush3.bf16.msra.mxu0 %v2404_v29  ;;  %v2426_v29 = vld [vmem:[%s3290_s3 + $0x10] sm:$0xff]  }
  0x2c   : > { %2204 = vmatprep.subr.bf16.mxu0 %v2407_v38  ;;  %v2435_v38 = vld [vmem:[%s3292_s5 + $0x18] sm:$0xff]  }
  0x2d   : > { %2191 = vmatpush3.bf16.msra.mxu1 %v2406_v34  ;;  %v2431_v34 = vld [vmem:[%s3290_s3 + $0x38] sm:$0xff]  }
  0x2e   : > { %849 = vmatmul.mubr.bf16.vlgmr.msra.gmra.mrb[0].mxu0 %v396_v37  ;;  %2265 = vmatprep.subr.bf16.mxu1 %v2421_v3  ;;  %v2434_v37 = vld [vmem:[%s3292_s5 + $0x10] sm:$0xff]  }
  0x2f   : > { %2205 = vmatpush3.bf16.msra.mxu0 %v2408_v42  ;;  %856 = vmatprep.mubr.bf16.mxu0 %v404_v55  ;;  %v2013_v42 = vld [vmem:[%s3289_s2] ss:$0 sm:$0xff] }
  0x30   : > { %898 = vmatmul.mubr.bf16.vlgmr.msra.gmra.mrb[0].mxu1 %v398_v45  ;;  %2206 = vmatprep.subr.bf16.mxu0 %v2409_v46 }
  0x31   : > { %905 = vmatprep.mubr.bf16.mxu1 %v406_v63  ;;  %2266 = vmatpush3.bf16.msra.mxu1 %v2421_v3 }
  0x32   : > { %2271 = vmatprep.subr.bf16.mxu1 %v2424_v27 }
  0x33   : > { %2207 = vmatpush3.bf16.msra.mxu0 %v2410_v47 }
  0x34   : > { %2208 = vmatprep.subr.bf16.mxu0 %v2411_v48 }
  0x36   : > { %857 = vmatmul.mubr.bf16.gmra.mrb[4].mxu0 %v403_v59 }
  0x37   : > { %2209 = vmatpush3.bf16.msra.mxu0 %v2412_v49  ;;  %946 = vmatprep.mubr.bf16.mxu0 %v401_v8 }
  0x38   : > { %2210 = vmatprep.subr.bf16.mxu0 %v2413_v50  ;;  %906 = vmatmul.mubr.bf16.gmra.mrb[4].mxu1 %v405_v2 }
  0x39   : > { %2267 = vmatprep.mubr.msk.bf16.mxu1 %vm809_vm0, %v402_v14 }
  0x3b   : > { %2211 = vmatpush3.bf16.msra.mxu0 %v2414_v51 }
  0x3c   : > { %2212 = vmatprep.subr.bf16.mxu0 %v2415_v54 }
  0x3f   : > { %2213 = vmatpush3.bf16.msra.mxu0 %v2416_v58 }
  0x40   : > { %2214 = vmatprep.subr.bf16.mxu0 %v2417_v1  ;;  %2268 = vmatmul.mubr.msk.bf16.vlgmr.msra.gmra.mrb[8].mxu1 %vm809_vm0, %v409_v15 }
  0x41   : > { %2272 = vmatpush3.bf16.msra.mxu1 %v2424_v27 }
  0x42   : > { %2273 = vmatprep.subr.bf16.mxu1 %v2425_v28 }
  0x43   : > { %2215 = vmatpush3.bf16.msra.mxu0 %v2418_v4 }
  0x44   : > { %2216 = vmatprep.subr.bf16.mxu0 %v2419_v5 }
  0x45   : > { %2274 = vmatpush3.bf16.msra.mxu1 %v2425_v28 }
  0x46   : > { %2275 = vmatprep.subr.bf16.mxu1 %v2426_v29 }
  0x47   : > { %2217 = vmatpush3.bf16.msra.mxu0 %v2420_v13 }
  0x48   : > { %2218 = vmatprep.subr.bf16.mxu0 %v2422_v16 }
  0x49   : > { %2276 = vmatpush3.bf16.msra.mxu1 %v2426_v29 }
  0x4a   : > { %2277 = vmatprep.subr.bf16.mxu1 %v2427_v30 }
  0x4b   : > { %2219 = vmatpush3.bf16.msra.mxu0 %v2423_v17 }
  0x4c   : > { %2291 = vmatprep.subr.bf16.mxu0 %v2432_v35 }
  0x4d   : > { %2278 = vmatpush3.bf16.msra.mxu1 %v2427_v30 }
  0x4e   : > { %947 = vmatmul.mubr.bf16.vlgmr.msra.gmra.mrb[8].mxu0 %v400_v22  ;;  %2279 = vmatprep.subr.bf16.mxu1 %v2428_v31 }
  0x4f   : > { %954 = vmatprep.mubr.bf16.mxu0 %v408_v23  ;;  %2292 = vmatpush3.bf16.msra.mxu0 %v2432_v35 }
  0x50   : > { %2293 = vmatprep.subr.bf16.mxu0 %v2433_v36 }
  0x51   : > { %2280 = vmatpush3.bf16.msra.mxu1 %v2428_v31 }
  0x52   : > { %2281 = vmatprep.subr.bf16.mxu1 %v2429_v32 }
  0x53   : > { %2294 = vmatpush3.bf16.msra.mxu0 %v2433_v36 }
  0x54   : > { %2295 = vmatprep.subr.bf16.mxu0 %v2434_v37 }
  0x55   : > { %2282 = vmatpush3.bf16.msra.mxu1 %v2429_v32 }
  0x56   : > { %955 = vmatmul.mubr.bf16.gmra.mrb[12].mxu0 %v407_v26  ;;  %2283 = vmatprep.subr.bf16.mxu1 %v2430_v33 }
  0x57   : > { %2296 = vmatpush3.bf16.msra.mxu0 %v2434_v37 }
  0x58   : > { %2297 = vmatprep.subr.bf16.mxu0 %v2435_v38 }
  0x59   : > { %2284 = vmatpush3.bf16.msra.mxu1 %v2430_v33 }
  0x5a   : > { %2285 = vmatprep.subr.bf16.mxu1 %v2431_v34 }
  0x5b   : > { %2298 = vmatpush3.bf16.msra.mxu0 %v2435_v38 }
  0x5c   : > { %2299 = vmatprep.subr.bf16.mxu0 %v2436_v39 }
  0x5d   : > { %2286 = vmatpush3.bf16.msra.mxu1 %v2431_v34 }
  0x5f   : > { %2300 = vmatpush3.bf16.msra.mxu0 %v2436_v39 }
  0x60   : > { %2301 = vmatprep.subr.bf16.mxu0 %v2437_v40 }
  0x63   : > { %2302 = vmatpush3.bf16.msra.mxu0 %v2437_v40  ;;  %v2438_v40 = vld [vmem:[%s3292_s5 + $0x30] sm:$0xff]  }
  0x64   : > { %2303 = vmatprep.subr.bf16.mxu0 %v2438_v40 }
  0x67   : > { %2304 = vmatpush3.bf16.msra.mxu0 %v2438_v40 }
 0x101   : > { %v2164_v41 = vpop.f32.mrb[0].mxu0 }
 0x102   : > { %v2165_v43 = vpop.f32.mrb[1].mxu0 }
 0x103   : > { %v2166_v44 = vadd.f32 %v2165_v43, %v2164_v41  ;;  %v2167_v45 = vpop.f32.mrb[2].mxu0  ;;  %v2192_v46 = vpop.f32.mrb[0].mxu1  ;;  %v2439_v41 = vld [vmem:[%s3292_s5 + $0x38] sm:$0xff]   ;;  %v2442_v43 = vld [vmem:[%s3294_s7 + $0x4] ss:$28 sps:$4 sm:$0xff]  }
 0x104   : > { %v2168_v47 = vpop.f32.mrb[3].mxu0  ;;  %v2193_v50 = vpop.f32.mrb[1].mxu1  ;;  %2305 = vmatprep.subr.bf16.mxu0 %v2439_v41  ;;  %1659 = vmatprep.subr.bf16.mxu1 %v2442_v43 }
 0x105   : > { %v851_v48 = vadd.f32 %v2166_v44, %v2013_v42  ;;  %v2169_v49 = vadd.f32 %v2168_v47, %v2167_v45  ;;  %v2194_v51 = vadd.f32 %v2193_v50, %v2192_v46  ;;  %v2195_v52 = vpop.f32.mrb[2].mxu1  ;;  %2306 = vmatpush3.bf16.msra.mxu0 %v2439_v41  ;;  %v2445_v44 = vld [vmem:[%s3294_s7 + $0xc] ss:$28 sps:$4 sm:$0xff]   ;;  %v2448_v45 = vld [vmem:[%s3294_s7 + $0x3c] ss:$28 sps:$4 sm:$0xff]  }
 0x106   : > { %v2196_v54 = vpop.f32.mrb[3].mxu1  ;;  %1712 = vmatprep.subr.bf16.mxu0 %v2445_v44  ;;  %v2446_v46 = vld [vmem:[%s3294_s7 + $0x38] ss:$28 sps:$4 sm:$0xff]   ;;  %v2458_v50 = vld [vmem:[%s3294_s7 + $0xa8] ss:$28 sps:$4 sm:$0xff]  }
 0x107   : > { %v854_v53 = vadd.f32 %v2169_v49, %v2013_v42  ;;  %v900_v55 = vadd.f32 %v2194_v51, %v851_v48  ;;  %v2197_v56 = vadd.f32 %v2196_v54, %v2195_v52  ;;  %v2454_v47 = vld [vmem:[%s3294_s7 + $0x74] ss:$28 sps:$4 sm:$0xff]   ;;  %v2460_v49 = vld [vmem:[%s3294_s7 + $0xac] ss:$28 sps:$4 sm:$0xff]   ;;  %v2466_v51 = vld [vmem:[%s3294_s7 + $0xe4] ss:$28 sps:$4 sm:$0xff]  }
 0x108   : > { %v2452_v48 = vld [vmem:[%s3294_s7 + $0x70] ss:$28 sps:$4 sm:$0xff]   ;;  %v2464_v52 = vld [vmem:[%s3294_s7 + $0xe0] ss:$28 sps:$4 sm:$0xff]   ;;  %v2470_v54 = vld [vmem:[%s3294_s7 + $0x118] ss:$28 sps:$4 sm:$0xff]  }
 0x109   : > { %v903_v57 = vadd.f32 %v2197_v56, %v854_v53  ;;  %v2170_v58 = vpop.f32.mrb[4].mxu0  ;;  %v2472_v53 = vld [vmem:[%s3294_s7 + $0x11c] ss:$28 sps:$4 sm:$0xff]   ;;  %v2494_v44 = vld [vmem:[%s3294_s7 + $0x4c] ss:$28 sps:$4 sm:$0xff]  }
 0x10a   : > { %v2171_v59 = vpop.f32.mrb[5].mxu0 }
 0x10b   : > { %v2172_v60 = vadd.f32 %v2171_v59, %v2170_v58  ;;  %v2173_v61 = vpop.f32.mrb[6].mxu0  ;;  %v2198_v62 = vpop.f32.mrb[4].mxu1 }
 0x10c   : > { %v2174_v63 = vpop.f32.mrb[7].mxu0  ;;  %v2199_v0 = vpop.f32.mrb[5].mxu1 }
 0x10d   : > { %v859_v1 = vadd.f32 %v2172_v60, %v2013_v42  ;;  %v2175_v2 = vadd.f32 %v2174_v63, %v2173_v61  ;;  %v2200_v3 = vadd.f32 %v2199_v0, %v2198_v62  ;;  %v2201_v4 = vpop.f32.mrb[6].mxu1 }
 0x10e   : > { %v2202_v5 = vpop.f32.mrb[7].mxu1 }
 0x10f   : > { %v862_v6 = vadd.f32 %v2175_v2, %v2013_v42  ;;  %v908_v7 = vadd.f32 %v2200_v3, %v859_v1  ;;  %v2203_v8 = vadd.f32 %v2202_v5, %v2201_v4  ;;  %v2440_v42 = vld [vmem:[%s3294_s7] ss:$28 sps:$4 sm:$0xff]  }
 0x111   : > { %v911_v9 = vadd.f32 %v2203_v8, %v862_v6  ;;  %v2443_v6 = vld [vmem:[%s3294_s7 + $0x8] ss:$28 sps:$4 sm:$0xff]   ;;  %v2449_v8 = vld [vmem:[%s3294_s7 + $0x40] ss:$28 sps:$4 sm:$0xff]  }
 0x113   : > { %v2269_v10 = vpop.f32.mrb[8].mxu1 }
 0x114   : > { %v997_v11 = vpop.f32.mrb[9].mxu1 }
 0x115   : > { %v2270_v12 = vpop.f32.mrb[10].mxu1 }
 0x116   : > { %v1000_v13 = vpop.f32.mrb[11].mxu1 }
 0x121   : > { %v2220_v14 = vpop.f32.mrb[8].mxu0 }
 0x122   : > { %v2221_v15 = vpop.f32.mrb[9].mxu0 }
 0x123   : > { %v2222_v16 = vadd.f32 %v2221_v15, %v2220_v14  ;;  %v2223_v17 = vpop.f32.mrb[10].mxu0  ;;  %v2467_v14 = vld [vmem:[%s3294_s7 + $0xe8] ss:$28 sps:$4 sm:$0xff]  }
 0x124   : > { %v2224_v18 = vpop.f32.mrb[11].mxu0  ;;  %v2475_v15 = vld [vmem:[%s3294_s7 + $0x124] ss:$28 sps:$4 sm:$0xff]  }
 0x125   : > { %v2225_v19 = vadd.f32 %v2224_v18, %v2223_v17  ;;  %v949_v20 = vadd.f32 %v2222_v16, %v900_v55  ;;  %v2065_v55 = vld [vmem:[%s3291_s4] ss:$0 sm:$0xff]  ;;  %v2478_v17 = vld [vmem:[%s3294_s7 + $0x154] ss:$28 sps:$4 sm:$0xff]   ;;  %v2481_v18 = vld [vmem:[%s3294_s7 + $0x15c] ss:$28 sps:$4 sm:$0xff]  }
 0x126   : > { %v2473_v16 = vld [vmem:[%s3294_s7 + $0x120] ss:$28 sps:$4 sm:$0xff]  }
 0x127   : > { %v998_v21 = vadd.f32 %v997_v11, %v949_v20  ;;  %v952_v22 = vadd.f32 %v2225_v19, %v903_v57  ;;  %v2463_v11 = vld [vmem:[%s3294_s7 + $0xb4] ss:$28 sps:$4 sm:$0xff]  }
 0x128   : > { %v2476_v19 = vld [vmem:[%s3294_s7 + $0x150] ss:$28 sps:$4 sm:$0xff]   ;;  %v2479_v20 = vld [vmem:[%s3294_s7 + $0x158] ss:$28 sps:$4 sm:$0xff]  }
 0x129   : > { %v1001_v23 = vadd.f32 %v1000_v13, %v952_v22  ;;  %v2226_v24 = vpop.f32.mrb[12].mxu0  ;;  %v1012_v26 = vmax.f32 %v998_v21, 0.0  ;;  %v2469_v13 = vld [vmem:[%s3294_s7 + $0xec] ss:$28 sps:$4 sm:$0xff]   ;;  %v2487_v22 = vld [vmem:[%s3294_s7 + $0x194] ss:$28 sps:$4 sm:$0xff]  }
 0x12a   : > { %v2227_v25 = vpop.f32.mrb[13].mxu0  ;;  %v2484_v21 = vld [vmem:[%s3294_s7 + $0x18c] ss:$28 sps:$4 sm:$0xff]  }
 0x12b   : > { %v1013_v27 = vmax.f32 %v1001_v23, 0.0  ;;  %v2228_v28 = vadd.f32 %v2227_v25, %v2226_v24  ;;  %v2229_v29 = vpop.f32.mrb[14].mxu0  ;;  %v2482_v23 = vld [vmem:[%s3294_s7 + $0x188] ss:$28 sps:$4 sm:$0xff]   ;;  %v2485_v24 = vld [vmem:[%s3294_s7 + $0x190] ss:$28 sps:$4 sm:$0xff]  }
 0x12c   : > { %v2230_v30 = vpop.f32.mrb[15].mxu0  ;;  %v2490_v25 = vld [vmem:[%s3294_s7 + $0x14] ss:$28 sps:$4 sm:$0xff]  }
 0x12d   : > { %v1016_v31 = vpack.c.bf16 %v1013_v27, %v1012_v26  ;;  %v957_v32 = vadd.f32 %v2228_v28, %v908_v7  ;;  %v2231_v33 = vadd.f32 %v2230_v30, %v2229_v29  ;;  %v2451_v7 = vld [vmem:[%s3294_s7 + $0x44] ss:$28 sps:$4 sm:$0xff]   ;;  %v2640_v26 = vmov 0   ;;  %v2491_v27 = vld [vmem:[%s3294_s7 + $0x18] ss:$28 sps:$4 sm:$0xff]  }
 0x12e   : > { %v2074_v28 = vld [vmem:[%s3293_s6] ss:$0 sm:$0xff] }
 0x12f   : > { %v1006_v34 = vadd.f32 %v2269_v10, %v957_v32  ;;  %v960_v35 = vadd.f32 %v2231_v33, %v911_v9  ;;  %2287 = vmatprep.mubr.bf16.mxu1 %v1016_v31  ;;  %v2457_v9 = vld [vmem:[%s3294_s7 + $0x7c] ss:$28 sps:$4 sm:$0xff]  }
 0x130   : > { %v2455_v10 = vld [vmem:[%s3294_s7 + $0x78] ss:$28 sps:$4 sm:$0xff]  }
 0x131   : > { %v1009_v36 = vadd.f32 %v2270_v12, %v960_v35  ;;  %v1014_v37 = vmax.f32 %v1006_v34, 0.0  ;;  %v2461_v12 = vld [vmem:[%s3294_s7 + $0xb0] ss:$28 sps:$4 sm:$0xff]  }
 0x133   : > { %v1015_v38 = vmax.f32 %v1009_v36, 0.0 }
 0x135   : > { %v1017_v39 = vpack.c.bf16 %v1015_v38, %v1014_v37 }
 0x137   : > { %2288 = vmatmul.mubr.bf16.vlgmr.msra.gmra.mrb[12].mxu1 %v1017_v39 }
 0x138   : > { %1660 = vmatpush1.bf16.msra.mxu1 %v2440_v42  ;;  %1691 = vmatprep.mubr.bf16.mxu1 %v2640_v26  ;;  %v2488_v42 = vld [vmem:[%s3294_s7 + $0x10] ss:$28 sps:$4 sm:$0xff]  }
 0x139   : > { %1661 = vmatprep.subr.bf16.mxu1 %v2448_v45  ;;  %v2495_v45 = vld [vmem:[%s3294_s7 + $0x50] ss:$28 sps:$4 sm:$0xff]  }
 0x13c   : > { %1662 = vmatpush1.bf16.msra.mxu1 %v2446_v46  ;;  %v2492_v46 = vld [vmem:[%s3294_s7 + $0x48] ss:$28 sps:$4 sm:$0xff]  }
 0x13d   : > { %1663 = vmatprep.subr.bf16.mxu1 %v2454_v47  ;;  %v2498_v47 = vld [vmem:[%s3294_s7 + $0x84] ss:$28 sps:$4 sm:$0xff]  }
 0x140   : > { %1664 = vmatpush1.bf16.msra.mxu1 %v2452_v48  ;;  %v2499_v48 = vld [vmem:[%s3294_s7 + $0x88] ss:$28 sps:$4 sm:$0xff]  }
 0x141   : > { %1665 = vmatprep.subr.bf16.mxu1 %v2460_v49  ;;  %v2496_v49 = vld [vmem:[%s3294_s7 + $0x80] ss:$28 sps:$4 sm:$0xff]  }
 0x144   : > { %1666 = vmatpush1.bf16.msra.mxu1 %v2458_v50  ;;  %v2502_v50 = vld [vmem:[%s3294_s7 + $0xbc] ss:$28 sps:$4 sm:$0xff]  }
 0x145   : > { %1667 = vmatprep.subr.bf16.mxu1 %v2466_v51  ;;  %v2503_v51 = vld [vmem:[%s3294_s7 + $0xc0] ss:$28 sps:$4 sm:$0xff]  }
 0x148   : > { %1668 = vmatpush1.bf16.msra.mxu1 %v2464_v52  ;;  %v2500_v52 = vld [vmem:[%s3294_s7 + $0xb8] ss:$28 sps:$4 sm:$0xff]  }
 0x149   : > { %1669 = vmatprep.subr.bf16.mxu1 %v2472_v53  ;;  %v2506_v53 = vld [vmem:[%s3294_s7 + $0xf4] ss:$28 sps:$4 sm:$0xff]  }
 0x14c   : > { %1670 = vmatpush1.bf16.msra.mxu1 %v2470_v54  ;;  %v2507_v54 = vld [vmem:[%s3294_s7 + $0xf8] ss:$28 sps:$4 sm:$0xff]  }
 0x14d   : > { %1671 = vmatprep.subr.bf16.mxu1 %v2478_v17 }
 0x150   : > { %1672 = vmatpush1.bf16.msra.mxu1 %v2476_v19 }
 0x151   : > { %1673 = vmatprep.subr.bf16.mxu1 %v2484_v21 }
 0x154   : > { %1674 = vmatpush1.bf16.msra.mxu1 %v2482_v23 }
 0x155   : > { %1765 = vmatprep.subr.bf16.mxu1 %v2490_v25 }
 0x20a   : > { %v2289_v56 = vpop.f32.mrb[12].mxu1 }
 0x20b   : > { %v1132_v57 = vadd.f32 %v2289_v56, %v2065_v55  ;;  %v1123_v58 = vpop.f32.mrb[13].mxu1  ;;  %v2510_v56 = vld [vmem:[%s3294_s7 + $0x12c] ss:$28 sps:$4 sm:$0xff]  }
 0x20c   : > { %v1124_v59 = vadd.f32 %v2065_v55, %v1123_v58  ;;  %v2290_v60 = vpop.f32.mrb[14].mxu1  ;;  %v2508_v58 = vld [vmem:[%s3294_s7 + $0x128] ss:$28 sps:$4 sm:$0xff]  }
 0x20d   : > { %v1135_v61 = vadd.f32 %v2290_v60, %v2065_v55  ;;  %v1126_v62 = vpop.f32.mrb[15].mxu1  ;;  %v1140_v0 = vmax.f32 %v1132_v57, 0.0  ;;  %v2511_v57 = vld [vmem:[%s3294_s7 + $0x130] ss:$28 sps:$4 sm:$0xff]   ;;  %v2515_v60 = vld [vmem:[%s3294_s7 + $0x168] ss:$28 sps:$4 sm:$0xff]  }
 0x20e   : > { %v1127_v63 = vadd.f32 %v2065_v55, %v1126_v62  ;;  %v1138_v2 = vmax.f32 %v1124_v59, 0.0  ;;  %v2504_v55 = vld [vmem:[%s3294_s7 + $0xf0] ss:$28 sps:$4 sm:$0xff]   ;;  %v2514_v59 = vld [vmem:[%s3294_s7 + $0x164] ss:$28 sps:$4 sm:$0xff]  }
 0x20f   : > { %v1141_v1 = vmax.f32 %v1135_v61, 0.0  ;;  %v2512_v61 = vld [vmem:[%s3294_s7 + $0x160] ss:$28 sps:$4 sm:$0xff]  }
 0x210   : > { %v1139_v3 = vmax.f32 %v1127_v63, 0.0  ;;  %v2518_v62 = vld [vmem:[%s3294_s7 + $0x19c] ss:$28 sps:$4 sm:$0xff]  }
 0x211   : > { %v1143_v4 = vpack.c.bf16 %v1141_v1, %v1140_v0  ;;  %v2519_v63 = vld [vmem:[%s3294_s7 + $0x1a0] ss:$28 sps:$4 sm:$0xff]   ;;  %v2516_v0 = vld [vmem:[%s3294_s7 + $0x198] ss:$28 sps:$4 sm:$0xff]   ;;  %v1336_v1 = vlaneseq }
 0x212   : > { %v1142_v5 = vpack.c.bf16 %v1139_v3, %v1138_v2 }
 0x213   : > { %v3167_v2 = vshrl.u32 %v1336_v1, 7 }
 0x214   : > { %2307 = vmatprep.mubr.bf16.mxu0 %v1142_v5  ;;  %v3174_v5 = vld [vmem:[%s3295_s8] sm:$0x7f] }
 0x215   : > { %2308 = vmatmul.mubr.bf16.vlgmr.msra.gmra.mrb[16].mxu0 %v1143_v4  ;;  %v1338_v3 = vsub.s32 0, %v3167_v2  ;;  %v1346_v4 = vsub.s32 2, %v3167_v2 }
 0x216   : > { %1713 = vmatpush1.bf16.msra.mxu0 %v2443_v6  ;;  %1744 = vmatprep.mubr.bf16.mxu0 %v2640_v26  ;;  %v1342_v6 = vsub.s32 1, %v3167_v2 }
 0x217   : > { %1714 = vmatprep.subr.bf16.mxu0 %v2451_v7  ;;  %v1350_v7 = vsub.s32 3, %v3167_v2 }
 0x21a   : > { %1715 = vmatpush1.bf16.msra.mxu0 %v2449_v8  ;;  %v1339_v8 = vrot.slane %v3174_v5, %v1338_v3 }
 0x21b   : > { %1716 = vmatprep.subr.bf16.mxu0 %v2457_v9  ;;  %v1347_v9 = vrot.slane %v3174_v5, %v1346_v4 }
 0x21e   : > { %1717 = vmatpush1.bf16.msra.mxu0 %v2455_v10  ;;  %v1343_v10 = vrot.slane %v3174_v5, %v1342_v6 }
 0x21f   : > { %1718 = vmatprep.subr.bf16.mxu0 %v2463_v11  ;;  %v1351_v11 = vrot.slane %v3174_v5, %v1350_v7 }
 0x222   : > { %1719 = vmatpush1.bf16.msra.mxu0 %v2461_v12 }
 0x223   : > { %1720 = vmatprep.subr.bf16.mxu0 %v2469_v13 }
 0x226   : > { %1721 = vmatpush1.bf16.msra.mxu0 %v2467_v14 }
 0x227   : > { %1722 = vmatprep.subr.bf16.mxu0 %v2475_v15 }
 0x22a   : > { %1723 = vmatpush1.bf16.msra.mxu0 %v2473_v16 }
 0x22b   : > { %1724 = vmatprep.subr.bf16.mxu0 %v2481_v18 }
 0x22e   : > { %1725 = vmatpush1.bf16.msra.mxu0 %v2479_v20 }
 0x22f   : > { %1726 = vmatprep.subr.bf16.mxu0 %v2487_v22 }
 0x232   : > { %1727 = vmatpush1.bf16.msra.mxu0 %v2485_v24 }
 0x233   : > { %2311 = vmatprep.subr.bf16.mxu0 %v2491_v27 }
 0x2e8   : > { %v2309_v29 = vpop.f32.mrb[16].mxu0 }
 0x2e9   : > { %v1258_v30 = vadd.f32 %v2309_v29, %v2074_v28  ;;  %v1249_v31 = vpop.f32.mrb[17].mxu0 }
 0x2ea   : > { %v1250_v32 = vadd.f32 %v2074_v28, %v1249_v31  ;;  %v2310_v33 = vpop.f32.mrb[18].mxu0 }
 0x2eb   : > { %v1261_v34 = vadd.f32 %v2310_v33, %v2074_v28  ;;  %v1252_v35 = vpop.f32.mrb[19].mxu0  ;;  %v1266_v37 = vmax.f32 %v1258_v30, 0.0 }
 0x2ec   : > { %v1253_v36 = vadd.f32 %v2074_v28, %v1252_v35  ;;  %v1264_v39 = vmax.f32 %v1250_v32, 0.0 }
 0x2ed   : > { %v1267_v38 = vmax.f32 %v1261_v34, 0.0 }
 0x2ee   : > { %v1265_v40 = vmax.f32 %v1253_v36, 0.0 }
 0x2ef   : > { %v3090_v41 = vpack.c.bf16 %v1267_v38, %v1266_v37 }
 0x2f0   : > { %v1268_v43 = vpack.c.bf16 %v1265_v40, %v1264_v39 }
 0x2f2   : > { %1692 = vmatmul.mubr.bf16.vlgmr.msra.gmra.mrb[16].mxu1 %v1268_v43  ;;  %1745 = vmatmul.mubr.bf16.vlgmr.msra.gmra.mrb[20].mxu0 %v1268_v43 }
 0x2f3   : > { %1766 = vmatpush1.bf16.msra.mxu1 %v2488_v42  ;;  %2312 = vmatpush3.bf16.msra.mxu0 %v2491_v27 }
 0x2f4   : > { %1767 = vmatprep.subr.bf16.mxu1 %v2494_v44  ;;  %2313 = vmatprep.subr.bf16.mxu0 %v2495_v45 }
 0x2f5   : > { %1701 = vmatprep.mubr.bf16.mxu1 %v2640_v26  ;;  %1754 = vmatprep.mubr.bf16.mxu0 %v2640_v26 }
 0x2f7   : > { %1768 = vmatpush1.bf16.msra.mxu1 %v2492_v46  ;;  %2314 = vmatpush3.bf16.msra.mxu0 %v2495_v45 }
 0x2f8   : > { %1769 = vmatprep.subr.bf16.mxu1 %v2498_v47  ;;  %2315 = vmatprep.subr.bf16.mxu0 %v2499_v48 }
 0x2fa   : > { %1702 = vmatmul.mubr.bf16.gmra.mrb[20].mxu1 %v3090_v41  ;;  %1755 = vmatmul.mubr.bf16.gmra.mrb[24].mxu0 %v3090_v41 }
 0x2fb   : > { %1770 = vmatpush1.bf16.msra.mxu1 %v2496_v49  ;;  %2316 = vmatpush3.bf16.msra.mxu0 %v2499_v48 }
 0x2fc   : > { %2327 = vmatprep.mubr.bf16.mxu0 %v1268_v43  ;;  %1771 = vmatprep.subr.bf16.mxu1 %v2502_v50 }
 0x2fd   : > { %2317 = vmatprep.subr.bf16.mxu0 %v2503_v51  ;;  %1797 = vmatprep.mubr.bf16.mxu1 %v2640_v26 }
 0x2ff   : > { %1772 = vmatpush1.bf16.msra.mxu1 %v2500_v52  ;;  %2318 = vmatpush3.bf16.msra.mxu0 %v2503_v51 }
 0x300   : > { %1773 = vmatprep.subr.bf16.mxu1 %v2506_v53  ;;  %2319 = vmatprep.subr.bf16.mxu0 %v2507_v54 }
 0x303   : > { %1774 = vmatpush1.bf16.msra.mxu1 %v2504_v55  ;;  %2320 = vmatpush3.bf16.msra.mxu0 %v2507_v54 }
 0x304   : > { %1775 = vmatprep.subr.bf16.mxu1 %v2510_v56  ;;  %2321 = vmatprep.subr.bf16.mxu0 %v2511_v57 }
 0x307   : > { %1776 = vmatpush1.bf16.msra.mxu1 %v2508_v58  ;;  %2322 = vmatpush3.bf16.msra.mxu0 %v2511_v57  ;;  %v1354_v57 = vsub.s32 4, %v3167_v2  ;;  %v1362_v58 = vsub.s32 6, %v3167_v2 }
 0x308   : > { %1777 = vmatprep.subr.bf16.mxu1 %v2514_v59  ;;  %2323 = vmatprep.subr.bf16.mxu0 %v2515_v60 }
 0x30b   : > { %1778 = vmatpush1.bf16.msra.mxu1 %v2512_v61  ;;  %2324 = vmatpush3.bf16.msra.mxu0 %v2515_v60  ;;  %v1358_v60 = vsub.s32 5, %v3167_v2 }
 0x30c   : > { %1779 = vmatprep.subr.bf16.mxu1 %v2518_v62  ;;  %2325 = vmatprep.subr.bf16.mxu0 %v2519_v63 }
 0x30d   : > { %v1359_v1 = vrot.slane %v3174_v5, %v1358_v60 }
 0x30f   : > { %1780 = vmatpush1.bf16.msra.mxu1 %v2516_v0  ;;  %2326 = vmatpush3.bf16.msra.mxu0 %v2519_v63  ;;  %v1355_v63 = vrot.slane %v3174_v5, %v1354_v57  ;;  %v1363_v0 = vrot.slane %v3174_v5, %v1362_v58 }
 0x312   : > { %1798 = vmatmul.mubr.bf16.vlgmr.msra.gmra.mrb[24].mxu1 %v1268_v43  ;;  %2328 = vmatmul.mubr.bf16.vlgmr.msra.gmra.mrb[28].mxu0 %v3090_v41 }
 0x313   : > { %1807 = vmatprep.mubr.bf16.mxu1 %v2640_v26 }
 0x31a   : > { %1808 = vmatmul.mubr.bf16.gmra.mrb[28].mxu1 %v3090_v41 }
 0x3c5   : > { %v1693_v12 = vpop.f32.mrb[16].mxu1  ;;  %v1746_v13 = vpop.f32.mrb[20].mxu0 }
 0x3c6   : > { %v1694_v14 = vadd.f32 %v1693_v12, %v1339_v8  ;;  %v1747_v15 = vadd.f32 %v1746_v13, %v1347_v9  ;;  %v1695_v16 = vpop.f32.mrb[17].mxu1  ;;  %v1748_v17 = vpop.f32.mrb[21].mxu0 }
 0x3c7   : > { %v1696_v18 = vadd.f32 %v1695_v16, %v1343_v10  ;;  %v1749_v19 = vadd.f32 %v1748_v17, %v1351_v11  ;;  %v1697_v20 = vpop.f32.mrb[18].mxu1  ;;  %v1750_v21 = vpop.f32.mrb[22].mxu0 }
 0x3c8   : > { %2520 = vtanh.f32 %v1694_v14  ;;  %v1698_v22 = vadd.f32 %v1697_v20, %v1339_v8  ;;  %v1699_v23 = vpop.f32.mrb[19].mxu1  ;;  %v1752_v24 = vpop.f32.mrb[23].mxu0  ;;  %v1751_v25 = vadd.f32 %v1750_v21, %v1347_v9 }
 0x3c9   : > { %2522 = vtanh.f32 %v1747_v15  ;;  %v1700_v26 = vadd.f32 %v1699_v23, %v1343_v10  ;;  %v1753_v27 = vadd.f32 %v1752_v24, %v1351_v11 }
 0x3ca   : > { %2524 = vtanh.f32 %v1696_v18 }
 0x3cb   : > { %2526 = vtanh.f32 %v1749_v19 }
 0x3cc   : > { %2528 = vtanh.f32 %v1698_v22 }
 0x3cd   : > { %2530 = vtanh.f32 %v1751_v25  ;;  %v1703_v28 = vpop.f32.mrb[20].mxu1  ;;  %v1756_v29 = vpop.f32.mrb[24].mxu0 }
 0x3ce   : > { %2532 = vtanh.f32 %v1700_v26  ;;  %v1704_v30 = vadd.f32 %v1703_v28, %v1339_v8  ;;  %v1757_v31 = vadd.f32 %v1756_v29, %v1347_v9  ;;  %v1705_v32 = vpop.f32.mrb[21].mxu1  ;;  %v1758_v33 = vpop.f32.mrb[25].mxu0 }
 0x3cf   : > { %2534 = vtanh.f32 %v1753_v27  ;;  %v1706_v34 = vadd.f32 %v1705_v32, %v1343_v10  ;;  %v1759_v35 = vadd.f32 %v1758_v33, %v1351_v11  ;;  %v1707_v36 = vpop.f32.mrb[22].mxu1  ;;  %v1760_v37 = vpop.f32.mrb[26].mxu0 }
 0x3d0   : > { %2536 = vtanh.f32 %v1704_v30  ;;  %v1708_v38 = vadd.f32 %v1707_v36, %v1339_v8  ;;  %v1709_v39 = vpop.f32.mrb[23].mxu1  ;;  %v1762_v40 = vpop.f32.mrb[27].mxu0  ;;  %v1761_v41 = vadd.f32 %v1760_v37, %v1347_v9 }
 0x3d1   : > { %2538 = vtanh.f32 %v1757_v31  ;;  %v1710_v43 = vadd.f32 %v1709_v39, %v1343_v10  ;;  %v1763_v45 = vadd.f32 %v1762_v40, %v1351_v11 }
 0x3d2   : > { %v2521_v42 = vpop.eup %2520  ;;  %2540 = vtanh.f32 %v1706_v34 }
 0x3d3   : > { %v2523_v44 = vpop.eup %2522  ;;  %1895 = vst [vmem:[%s3184_s14] sm:$0xff] %v2521_v42  ;;  %2542 = vtanh.f32 %v1759_v35 }
 0x3d4   : > { %v2525_v46 = vpop.eup %2524  ;;  %1897 = vst [vmem:[%s3184_s14 + $0x10] sm:$0xff] %v2523_v44  ;;  %2544 = vtanh.f32 %v1708_v38 }
 0x3d5   : > { %v2527_v47 = vpop.eup %2526  ;;  %1896 = vst [vmem:[%s3184_s14 + $0x8] sm:$0xff] %v2525_v46  ;;  %2546 = vtanh.f32 %v1761_v41 }
 0x3d6   : > { %v2529_v48 = vpop.eup %2528  ;;  %1898 = vst [vmem:[%s3184_s14 + $0x18] sm:$0xff] %v2527_v47  ;;  %2548 = vtanh.f32 %v1710_v43 }
 0x3d7   : > { %v2531_v49 = vpop.eup %2530  ;;  %1902 = vst [vmem:[%s3184_s14 + $0x38] sm:$0xff] %v2529_v48  ;;  %2550 = vtanh.f32 %v1763_v45 }
 0x3d8   : > { %v2533_v50 = vpop.eup %2532  ;;  %1904 = vst [vmem:[%s3184_s14 + $0x48] sm:$0xff] %v2531_v49 }
 0x3d9   : > { %v2535_v51 = vpop.eup %2534  ;;  %1903 = vst [vmem:[%s3184_s14 + $0x40] sm:$0xff] %v2533_v50 }
 0x3da   : > { %v2537_v52 = vpop.eup %2536  ;;  %1905 = vst [vmem:[%s3184_s14 + $0x50] sm:$0xff] %v2535_v51 }
 0x3db   : > { %v2539_v53 = vpop.eup %2538  ;;  %1909 = vst [vmem:[%s3184_s14 + $0x70] sm:$0xff] %v2537_v52 }
 0x3dc   : > { %v2541_v54 = vpop.eup %2540  ;;  %1911 = vst [vmem:[%s3184_s14 + $0x80] sm:$0xff] %v2539_v53 }
 0x3dd   : > { %v2543_v55 = vpop.eup %2542  ;;  %1910 = vst [vmem:[%s3184_s14 + $0x78] sm:$0xff] %v2541_v54 }
 0x3de   : > { %v2545_v56 = vpop.eup %2544  ;;  %1912 = vst [vmem:[%s3184_s14 + $0x88] sm:$0xff] %v2543_v55 }
 0x3df   : > { %v2547_v59 = vpop.eup %2546  ;;  %1916 = vst [vmem:[%s3184_s14 + $0xa8] sm:$0xff] %v2545_v56 }
 0x3e0   : > { %v2549_v61 = vpop.eup %2548  ;;  %1918 = vst [vmem:[%s3184_s14 + $0xb8] sm:$0xff] %v2547_v59 }
 0x3e1   : > { %v2551_v62 = vpop.eup %2550  ;;  %1917 = vst [vmem:[%s3184_s14 + $0xb0] sm:$0xff] %v2549_v61 }
 0x3e2   : > { %1919 = vst [vmem:[%s3184_s14 + $0xc0] sm:$0xff] %v2551_v62 }
 0x3e5   : > { %v1799_v3 = vpop.f32.mrb[24].mxu1  ;;  %v2329_v4 = vpop.f32.mrb[28].mxu0 }
 0x3e6   : > { %v1800_v6 = vadd.f32 %v1799_v3, %v1355_v63  ;;  %v1861_v7 = vadd.f32 %v2329_v4, %v1363_v0  ;;  %v1801_v8 = vpop.f32.mrb[25].mxu1  ;;  %v1852_v9 = vpop.f32.mrb[29].mxu0 }
 0x3e7   : > { %v1802_v10 = vadd.f32 %v1801_v8, %v1359_v1  ;;  %v1853_v11 = vadd.f32 %v1852_v9, %v1363_v0  ;;  %v1803_v2 = vpop.f32.mrb[26].mxu1  ;;  %v2330_v12 = vpop.f32.mrb[30].mxu0 }
 0x3e8   : > { %2552 = vtanh.f32 %v1800_v6  ;;  %v1804_v13 = vadd.f32 %v1803_v2, %v1355_v63  ;;  %v1805_v14 = vpop.f32.mrb[27].mxu1  ;;  %v1855_v15 = vpop.f32.mrb[31].mxu0  ;;  %v1864_v16 = vadd.f32 %v2330_v12, %v1363_v0 }
 0x3e9   : > { %2554 = vtanh.f32 %v1861_v7  ;;  %v1806_v17 = vadd.f32 %v1805_v14, %v1359_v1  ;;  %v1856_v5 = vadd.f32 %v1855_v15, %v1363_v0 }
 0x3ea   : > { %2556 = vtanh.f32 %v1802_v10 }
 0x3eb   : > { %2558 = vtanh.f32 %v1853_v11 }
 0x3ec   : > { %2560 = vtanh.f32 %v1804_v13 }
 0x3ed   : > { %2562 = vtanh.f32 %v1864_v16  ;;  %v1809_v18 = vpop.f32.mrb[28].mxu1 }
 0x3ee   : > { %2564 = vtanh.f32 %v1806_v17  ;;  %v1810_v19 = vadd.f32 %v1809_v18, %v1355_v63  ;;  %v1811_v20 = vpop.f32.mrb[29].mxu1 }
 0x3ef   : > { %2566 = vtanh.f32 %v1856_v5  ;;  %v1812_v21 = vadd.f32 %v1811_v20, %v1359_v1  ;;  %v1813_v22 = vpop.f32.mrb[30].mxu1 }
 0x3f0   : > { %2568 = vtanh.f32 %v1810_v19  ;;  %v1814_v23 = vadd.f32 %v1813_v22, %v1355_v63  ;;  %v1815_v24 = vpop.f32.mrb[31].mxu1 }
 0x3f1   : > { %2570 = vtanh.f32 %v1812_v21  ;;  %v1816_v25 = vadd.f32 %v1815_v24, %v1359_v1 }
 0x3f2   : > { %v2553_v26 = vpop.eup %2552  ;;  %2572 = vtanh.f32 %v1814_v23 }
 0x3f3   : > { %v2555_v27 = vpop.eup %2554  ;;  %1899 = vst [vmem:[%s3184_s14 + $0x20] sm:$0xff] %v2553_v26  ;;  %2574 = vtanh.f32 %v1816_v25 }
 0x3f4   : > { %v2557_v28 = vpop.eup %2556  ;;  %1915 = vst.msk [vmem:[%s3184_s14 + $0xa0] sm:$0xff] %vm809_vm0, %v2555_v27 }
 0x3f5   : > { %v2559_v29 = vpop.eup %2558  ;;  %1900 = vst [vmem:[%s3184_s14 + $0x28] sm:$0xff] %v2557_v28 }
 0x3f6   : > { %v2561_v30 = vpop.eup %2560  ;;  %1901 = vst.msk [vmem:[%s3184_s14 + $0x30] sm:$0xff] %vm809_vm0, %v2559_v29 }
 0x3f7   : > { %v2563_v31 = vpop.eup %2562  ;;  %1906 = vst [vmem:[%s3184_s14 + $0x58] sm:$0xff] %v2561_v30 }
 0x3f8   : > { %v2565_v32 = vpop.eup %2564  ;;  %1922 = vst.msk [vmem:[%s3184_s14 + $0xd8] sm:$0xff] %vm809_vm0, %v2563_v31  ;;  %1930 = sbr.rel (!%p2732_p5) target bundleno = 1052 (0x41c), region = 60 }
 0x3f9   : > { %v2567_v33 = vpop.eup %2566  ;;  %1907 = vst [vmem:[%s3184_s14 + $0x60] sm:$0xff] %v2565_v32 }
 0x3fa   : > { %v2569_v34 = vpop.eup %2568  ;;  %1908 = vst.msk [vmem:[%s3184_s14 + $0x68] sm:$0xff] %vm809_vm0, %v2567_v33 }
 0x3fb   : > { %v2571_v35 = vpop.eup %2570  ;;  %1913 = vst [vmem:[%s3184_s14 + $0x90] sm:$0xff] %v2569_v34 }
 0x3fc   : > { %v2573_v36 = vpop.eup %2572  ;;  %1914 = vst [vmem:[%s3184_s14 + $0x98] sm:$0xff] %v2571_v35 }
 0x3fd   : > { %v2575_v37 = vpop.eup %2574  ;;  %1920 = vst [vmem:[%s3184_s14 + $0xc8] sm:$0xff] %v2573_v36 }
 0x3fe   : > { %1921 = vst [vmem:[%s3184_s14 + $0xd0] sm:$0xff] %v2575_v37 }
 0x3ff   : > { %s3304_s17 = smov (!%p1933_p11, %s1932_s17), 4 }
 0x400   : > { %s3231_s21 = smul.u32 896, %s3304_s17 }
 0x402   : > { %s1938_s27 = ssub.s32 3584, %s3231_s21 }
 0x403   : > { %1939 = vsyncadd %s3226_s16, %s1938_s27  ;;  %p2142_p12 = scmp.ne.s32.totalorder %s3231_s21, 0  ;;  %s2333_s22 = smul.u32 3584, %s2715_s13 }
 0x404   : > { %s1945_s28 = sshll.u32 %s3184_s14, 4  ;;  %s2641_s29 = smov [#allocation2]   ;;  %s3243_s28 = int_to_ptr.vmem [resolvable:$true] %s1945_s28 }
 0x405   : > { %s3241_s24 = scalar_lea.hbm %s3296_s9, %s2333_s22  ;;  %s2576_s25 = scalar_lea.vmem %s3243_s28, %s3231_s21 }
 0x406   : > { %p2577_p13 = scmp.ne.s32.totalorder %s3243_s28, %s2576_s25  ;;  %s2580_s26 = sshll.u32 %s2641_s29, 4  ;;  %s2581_s26 = int_to_ptr.vmem [resolvable:$false] %s2580_s26 }
 0x407   : > { %s2582_s13 = scalar_lea.vmem %s2581_s26, 7168  ;;  %p2583_p2 = scmp.lt.s32.totalorder %s3243_s28, %s2581_s26 }
 0x408   : > { %p2578_p0 = pnand %p2577_p13, %p2142_p12  ;;  %p2584_p3 = scmp.lt.s32.totalorder %s2582_s13, %s2576_s25 }
 0x40a   : > { %p2579_p1 = pneg %p2578_p0  ;;  %p2585_p4 = por %p2584_p3, %p2583_p2 }
 0x40c   : > { %p2586_p5 = pnand %p2585_p4, %p2579_p1 }
 0x40e   : > { %2589 = shalt.err (!%p2586_p5)
}
 0x40f   : > { %s2590_s14 = scalar_lea.hbm %s3241_s24, %s3231_s21  ;;  %s2594_s22 = scalar_lea.hbm %s3296_s9, 4480 }
 0x410   : > { %p2591_p7 = scmp.ne.s32.totalorder %s3241_s24, %s2590_s14  ;;  %p2595_p10 = scmp.lt.u32.totalorder %s3241_s24, %s3296_s9 }
 0x411   : > { %p2596_p11 = scmp.lt.u32.totalorder %s2594_s22, %s2590_s14  ;;  %p2598_p0 = scmp.lt.u32.totalorder %s2590_s14, %s3241_s24 }
 0x412   : > { %p2592_p8 = pnand %p2591_p7, %p2142_p12 }
 0x413   : > { %p2597_p13 = por %p2596_p11, %p2595_p10 }
 0x414   : > { %p2593_p9 = pneg %p2592_p8 }
 0x415   : > { %p2599_p1 = por %p2598_p0, %p2597_p13 }
 0x417   : > { %p2600_p2 = pnand %p2599_p1, %p2593_p9 }
 0x419   : > { %2603 = shalt.err (!%p2600_p2)
}
 0x41a   : > { %s2642_s25 = smov 896   ;;  %s2643_s29 = smov 56  }
 0x41b   : > { %1951 = dma.vmem_to_hbm [thread:$0]  (%p2142_p12), %s3243_s28, %s3231_s21, %s3241_s24, %s3226_s16, %s2642_s25, %s2642_s25, %s2643_s29  }
 0x41c PF: > { %p2339_p3 = scmp.ge.s32.totalorder %s2638_s12, 2  ;;  %s1960_s26 = sand.u32 1, %s2626_s30  }
 0x41d   : > { %s1961_s13 = scalar_lea.sflag [#allocation3], %s1960_s26 }
 0x41e   : > { %p2336_p4 = pnand %p2339_p3, %p2736_p6 }
 0x420   : > { %2621 = dma.done.wait (!%p2336_p4), %s1961_s13, 3584  }
 0x421   : > { %2623 = vsyncadd (!%p2336_p4), %s1961_s13, 4294963712  ;;  %p19_p5 = scmp.ge.s32.totalorder %s2719_s15, 4   ;;  %s3299_s30 = smov %s2630_s10 }
 0x422   : > { %s3300_s10 = smov %s2634_s11  ;;  %s3301_s11 = smov %s2730_s18 }
 0x423   : > { %s3302_s12 = smov %s2719_s15  ;;  %21 = sbr.rel (!%p19_p5) target bundleno = 3 (0x3), region = 91 }
 0x42a   :  { %1966 = vsyncpa [#allocation3], 1 }
 0x42b   :  { %1968 = vsyncpa [#allocation3 + $0x1], 1 }

</bundles_post_ra>
